<compile_context>
chip_gen: v7x
topology: tpu7x:2x2x1
jax: 0.10.0
libtpu: 0.0.40
codegen_flags: <defaults>
</compile_context>

<pallas_src>
import functools

import jax
import jax.numpy as jnp
from jax.experimental import pallas as pl
from jax.experimental.pallas import tpu as pltpu

LANE = 128          # TPU vreg lane width
SUBLANE_BF16 = 16   # bf16 sublane tile (packed)


def _round_up(n, m):
    return ((n + m - 1) // m) * m


def _mlp_kernel(x_ref, w_ref, o_ref, *, num_layers, d_out):
    """Full MLP forward on one activation tile (all operands VMEM-resident).

    x_ref: (TB, 128)         bf16 activations; lane 127 == 1.0 (bias lane)
    w_ref: (L+2, 128, 128)   bf16 weights with bias folded into row 127
    o_ref: (TB, 128)         f32 output (first d_out lanes valid)
    """
    # Matmuls: bf16-in / f32-acc on the MXU.  Elementwise chain stays f32 so
    # the kernel is efficient on v5e (no bf16 VPU/EUP) as well as v6e/v7x.
    acc = jnp.dot(x_ref[...], w_ref[0], preferred_element_type=jnp.float32)
    acc = jnp.maximum(acc, 0.0)          # lane 127 stays 1.0 through ReLU

    # Hidden layers + ReLU (static unroll over the layer count).
    for i in range(num_layers):
        acc = jnp.dot(acc.astype(jnp.bfloat16), w_ref[1 + i],
                      preferred_element_type=jnp.float32)
        acc = jnp.maximum(acc, 0.0)

    # Output layer (bias folded in, no separate add).
    logits = jnp.dot(acc.astype(jnp.bfloat16), w_ref[num_layers + 1],
                     preferred_element_type=jnp.float32)

    # Only the first d_out lanes are real; the rest are padding.
    lane_ids = jax.lax.broadcasted_iota(jnp.int32, logits.shape, 1)
    valid = lane_ids < d_out

    if d_out == 2:
        # torch.sigmoid — numerically stable; approx reciprocal goes to the
        # EUP and is well inside the 2e-2 tolerance.
        z = jnp.exp(-jnp.abs(logits))
        inv = pl.reciprocal(1.0 + z, approx=True)
        o_ref[...] = jnp.where(logits >= 0, inv, z * inv)
    else:
        # F.softmax(..., dim=1): padded lanes masked out; EXACT divide for the
        # normalization so row sums hit 1.0 to ~1e-6.
        masked = jnp.where(valid, logits, -jnp.inf)
        m = jnp.max(masked, axis=-1, keepdims=True)
        e = jnp.where(valid, jnp.exp(masked - m), 0.0)
        o_ref[...] = e / jnp.sum(e, axis=-1, keepdims=True)


def pack_params(params):
    """Fold biases into padded [128,128] weights and stack into one bf16 slab.

    Runs ONCE at init; mlp_forward takes the slab directly (no per-call
    pad/concat/cast graph).
    """
    w_in, b_in, w_hid, b_hid, w_out, b_out = params
    d_in, h = w_in.shape
    num_layers = w_hid.shape[0]
    d_out = w_out.shape[1]
    # Lane 127 is reserved for the folded bias; everything must fit below it.
    assert d_in <= LANE - 1 and h <= LANE - 1 and d_out <= LANE - 1, (
        "pack_params assumes d_in, h, d_out <= 127 (single-tile layout)")

    def fold(w, b):
        r, c = w.shape
        wp = jnp.zeros((LANE, LANE), jnp.float32)
        wp = wp.at[:r, :c].set(w)
        wp = wp.at[LANE - 1, :c].set(b)      # bias row
        wp = wp.at[LANE - 1, LANE - 1].set(1.0)   # keep the "1" lane alive
        return wp

    slabs = [fold(w_in, b_in)]
    for i in range(num_layers):
        slabs.append(fold(w_hid[i], b_hid[i]))
    slabs.append(fold(w_out, b_out))
    return jnp.stack(slabs, axis=0).astype(jnp.bfloat16)   # (L+2, 128, 128)


def mlp_forward(x, w_slab, *, num_layers, d_out, block_b=512):
    """x: (B, d_in) f32/bf16.  w_slab: packed (L+2,128,128) bf16 from pack_params."""
    B, d_in = x.shape
    nb = w_slab.shape[0]

    small = B <= block_b
    bp = _round_up(max(B, SUBLANE_BF16), SUBLANE_BF16) if small \
        else _round_up(B, block_b)

    # Pre-cast to bf16, pad to (bp, 128), set the bias lane (127) to 1.0.
    x_p = jnp.zeros((bp, LANE), jnp.bfloat16)
    x_p = x_p.at[:B, :d_in].set(x.astype(jnp.bfloat16))
    x_p = x_p.at[:, LANE - 1].set(1.0)

    kernel = functools.partial(_mlp_kernel, num_layers=num_layers, d_out=d_out)
    out_shape = jax.ShapeDtypeStruct((bp, LANE), jnp.float32)

    if small:
        # Single un-gridded launch: at tiny B the kernel is launch/DMA-latency
        # bound and a grid only adds per-step overhead.
        vmem = pl.BlockSpec(memory_space=pltpu.MemorySpace.VMEM)
        out = pl.pallas_call(
            kernel,
            out_shape=out_shape,
            in_specs=[vmem, vmem],
            out_specs=vmem,
        )(x_p, w_slab)
    else:
        # Large B: 1-D grid over batch rows.  Weight slab uses a constant
        # index_map (stays VMEM-resident, no re-DMA); activation blocks are
        # double-buffered; "parallel" lets v7x shard rows across both
        # TensorCores.  VMEM stays well under the 32 MiB scoped default
        # (important on v7x where physical VMEM is 64 MiB per TC).
        out = pl.pallas_call(
            kernel,
            out_shape=out_shape,
            grid_spec=pltpu.PrefetchScalarGridSpec(
                num_scalar_prefetch=0,
                grid=(bp // block_b,),
                in_specs=[
                    pl.BlockSpec((block_b, LANE), lambda i: (i, 0)),
                    pl.BlockSpec((nb, LANE, LANE), lambda i: (0, 0, 0)),
                ],
                out_specs=pl.BlockSpec((block_b, LANE), lambda i: (i, 0)),
            ),
            compiler_params=pltpu.CompilerParams(
                dimension_semantics=("parallel",)),
        )(x_p, w_slab)

    return out[:B, :d_out]


def init_params(key, d_in, h, d_out, num_layers):
    """Deterministic init mimicking nn.Linear's U(-1/sqrt(fan_in), +1/sqrt(fan_in))."""
    ks = jax.random.split(key, 6)
    s_in = 1.0 / jnp.sqrt(d_in)
    s_h = 1.0 / jnp.sqrt(h)
    w_in = jax.random.uniform(ks[0], (d_in, h), jnp.float32, -s_in, s_in)
    b_in = jax.random.uniform(ks[1], (h,), jnp.float32, -s_in, s_in)
    w_hid = jax.random.uniform(ks[2], (num_layers, h, h), jnp.float32, -s_h, s_h)
    b_hid = jax.random.uniform(ks[3], (num_layers, h), jnp.float32, -s_h, s_h)
    w_out = jax.random.uniform(ks[4], (h, d_out), jnp.float32, -s_h, s_h)
    b_out = jax.random.uniform(ks[5], (d_out,), jnp.float32, -s_h, s_h)
    return w_in, b_in, w_hid, b_hid, w_out, b_out


def ref_forward(x, params, num_layers, d_out):
    """Pure-JAX f32 reference matching the PyTorch forward."""
    w_in, b_in, w_hid, b_hid, w_out, b_out = params
    out = jnp.maximum(x @ w_in + b_in, 0.0)
    for i in range(num_layers):
        out = jnp.maximum(out @ w_hid[i] + b_hid[i], 0.0)
    logits = out @ w_out + b_out
    if d_out == 2:
        return jax.nn.sigmoid(logits)
    return jax.nn.softmax(logits, axis=1)


if __name__ == "__main__":
    # Net(d_in=16, h=32, d_out=4, l=2, p=0.5); dropout is defined in __init__
    # but never applied in forward (eval path), so it is intentionally omitted.
    # TODO(synk): nn.Dropout is unused in the reference forward; not implemented.
    B, D_IN, H, D_OUT, L = 8, 16, 32, 4, 2

    key = jax.random.PRNGKey(0)
    kx, kp, kp2, kxl = jax.random.split(key, 4)
    x = jax.random.normal(kx, (B, D_IN), dtype=jnp.float32)

    fwd = jax.jit(mlp_forward, static_argnames=("num_layers", "d_out", "block_b"))

    # --- softmax path (d_out = 4) ---
    params = init_params(kp, D_IN, H, D_OUT, L)
    w_slab = pack_params(params)                 # packed once, reused per call
    y = fwd(x, w_slab, num_layers=L, d_out=D_OUT)
    y = jax.block_until_ready(y)
    y_ref = ref_forward(x, params, L, D_OUT)
    assert y.shape == (B, D_OUT)
    assert jnp.allclose(jnp.sum(y, axis=-1), 1.0, atol=1e-5)
    assert jnp.allclose(y, y_ref, atol=2e-2), "softmax path mismatch vs f32 ref"

    # --- sigmoid path (d_out = 2) ---
    params2 = init_params(kp2, D_IN, H, 2, L)
    w_slab2 = pack_params(params2)
    y2 = fwd(x, w_slab2, num_layers=L, d_out=2)
    y2 = jax.block_until_ready(y2)
    y2_ref = ref_forward(x, params2, L, 2)
    assert y2.shape == (B, 2)
    assert bool(jnp.all((y2 > 0.0) & (y2 < 1.0)))
    assert jnp.allclose(y2, y2_ref, atol=2e-2), "sigmoid path mismatch vs f32 ref"

    # --- large-batch path: exercises the 1-D batch grid (parallel axis) ---
    BL = 600
    xl = jax.random.normal(kxl, (BL, D_IN), dtype=jnp.float32)
    yl = fwd(xl, w_slab, num_layers=L, d_out=D_OUT, block_b=512)
    yl = jax.block_until_ready(yl)
    yl_ref = ref_forward(xl, params, L, D_OUT)
    assert yl.shape == (BL, D_OUT)
    assert jnp.allclose(jnp.sum(yl, axis=-1), 1.0, atol=1e-5)
    assert jnp.allclose(yl, yl_ref, atol=2e-2), "large-batch path mismatch vs f32 ref"

    print("KERNEL_OK")
</pallas_src>

<mosaic_0001>
module attributes {stable_mosaic.version = 11 : i64} {
  func.func @_mlp_kernel(%arg0: memref<16x128xbf16, #tpu.memory_space<vmem>>, %arg1: memref<4x128x128xbf16, #tpu.memory_space<vmem>>, %arg2: memref<16x128xf32, #tpu.memory_space<vmem>>) attributes {dimension_semantics = [], scalar_prefetch = 0 : i64, scratch_operands = 0 : i64, tpu.core_type = #tpu.core_type<tc>} {
    %c0 = arith.constant 0 : index
    %c0_0 = arith.constant 0 : index
    %0 = vector.load %arg0[%c0, %c0_0] : memref<16x128xbf16, #tpu.memory_space<vmem>>, vector<16x128xbf16>
    %c0_1 = arith.constant 0 : index
    %c0_2 = arith.constant 0 : index
    %c0_3 = arith.constant 0 : index
    %1 = vector.load %arg1[%c0_1, %c0_2, %c0_3] : memref<4x128x128xbf16, #tpu.memory_space<vmem>>, vector<1x128x128xbf16>
    %2 = vector.shape_cast %1 : vector<1x128x128xbf16> to vector<128x128xbf16>
    %cst = arith.constant dense<0.000000e+00> : vector<16x128xf32>
    %3 = tpu.matmul %0, %2, %cst {dimension_numbers = #tpu.dot_dimension_numbers<[1], [0], [0], [1], [0, 0, 1, 1], [], []>} : vector<16x128xbf16>, vector<128x128xbf16>, vector<16x128xf32> -> vector<16x128xf32>
    %cst_4 = arith.constant 0.000000e+00 : f32
    %4 = vector.broadcast %cst_4 : f32 to vector<16x128xf32>
    %5 = arith.maximumf %3, %4 : vector<16x128xf32>
    %6 = arith.truncf %5 : vector<16x128xf32> to vector<16x128xbf16>
    %c1 = arith.constant 1 : index
    %c0_5 = arith.constant 0 : index
    %c0_6 = arith.constant 0 : index
    %7 = vector.load %arg1[%c1, %c0_5, %c0_6] : memref<4x128x128xbf16, #tpu.memory_space<vmem>>, vector<1x128x128xbf16>
    %8 = vector.shape_cast %7 : vector<1x128x128xbf16> to vector<128x128xbf16>
    %cst_7 = arith.constant dense<0.000000e+00> : vector<16x128xf32>
    %9 = tpu.matmul %6, %8, %cst_7 {dimension_numbers = #tpu.dot_dimension_numbers<[1], [0], [0], [1], [0, 0, 1, 1], [], []>} : vector<16x128xbf16>, vector<128x128xbf16>, vector<16x128xf32> -> vector<16x128xf32>
    %cst_8 = arith.constant 0.000000e+00 : f32
    %10 = vector.broadcast %cst_8 : f32 to vector<16x128xf32>
    %11 = arith.maximumf %9, %10 : vector<16x128xf32>
    %12 = arith.truncf %11 : vector<16x128xf32> to vector<16x128xbf16>
    %c2 = arith.constant 2 : index
    %c0_9 = arith.constant 0 : index
    %c0_10 = arith.constant 0 : index
    %13 = vector.load %arg1[%c2, %c0_9, %c0_10] : memref<4x128x128xbf16, #tpu.memory_space<vmem>>, vector<1x128x128xbf16>
    %14 = vector.shape_cast %13 : vector<1x128x128xbf16> to vector<128x128xbf16>
    %cst_11 = arith.constant dense<0.000000e+00> : vector<16x128xf32>
    %15 = tpu.matmul %12, %14, %cst_11 {dimension_numbers = #tpu.dot_dimension_numbers<[1], [0], [0], [1], [0, 0, 1, 1], [], []>} : vector<16x128xbf16>, vector<128x128xbf16>, vector<16x128xf32> -> vector<16x128xf32>
    %cst_12 = arith.constant 0.000000e+00 : f32
    %16 = vector.broadcast %cst_12 : f32 to vector<16x128xf32>
    %17 = arith.maximumf %15, %16 : vector<16x128xf32>
    %18 = arith.truncf %17 : vector<16x128xf32> to vector<16x128xbf16>
    %c3 = arith.constant 3 : index
    %c0_13 = arith.constant 0 : index
    %c0_14 = arith.constant 0 : index
    %19 = vector.load %arg1[%c3, %c0_13, %c0_14] : memref<4x128x128xbf16, #tpu.memory_space<vmem>>, vector<1x128x128xbf16>
    %20 = vector.shape_cast %19 : vector<1x128x128xbf16> to vector<128x128xbf16>
    %cst_15 = arith.constant dense<0.000000e+00> : vector<16x128xf32>
    %21 = tpu.matmul %18, %20, %cst_15 {dimension_numbers = #tpu.dot_dimension_numbers<[1], [0], [0], [1], [0, 0, 1, 1], [], []>} : vector<16x128xbf16>, vector<128x128xbf16>, vector<16x128xf32> -> vector<16x128xf32>
    %22 = tpu.iota {dimensions = array<i32: 1>} : vector<16x128xi32>
    %c4_i32 = arith.constant 4 : i32
    %23 = vector.broadcast %c4_i32 : i32 to vector<16x128xi32>
    %24 = arith.cmpi slt, %22, %23 : vector<16x128xi32>
    %cst_16 = arith.constant 0xFF800000 : f32
    %25 = vector.broadcast %cst_16 : f32 to vector<16x128xf32>
    %26 = arith.select %24, %21, %25 : vector<16x128xi1>, vector<16x128xf32>
    %cst_17 = arith.constant dense<0xFF800000> : vector<16xf32>
    %27 = vector.multi_reduction <maximumf>, %26, %cst_17 [1] : vector<16x128xf32> to vector<16xf32>
    %28 = vector.shape_cast %27 : vector<16xf32> to vector<16x1xf32>
    %29 = vector.broadcast %28 : vector<16x1xf32> to vector<16x128xf32>
    %30 = arith.subf %26, %29 : vector<16x128xf32>
    %31 = math.exp %30 : vector<16x128xf32>
    %cst_18 = arith.constant 0.000000e+00 : f32
    %32 = vector.broadcast %cst_18 : f32 to vector<16x128xf32>
    %33 = arith.select %24, %31, %32 : vector<16x128xi1>, vector<16x128xf32>
    %cst_19 = arith.constant dense<0.000000e+00> : vector<16xf32>
    %34 = vector.multi_reduction <add>, %33, %cst_19 [1] : vector<16x128xf32> to vector<16xf32>
    %35 = vector.shape_cast %34 : vector<16xf32> to vector<16x1xf32>
    %36 = vector.broadcast %35 : vector<16x1xf32> to vector<16x128xf32>
    %37 = arith.divf %33, %36 : vector<16x128xf32>
    %c0_20 = arith.constant 0 : index
    %c0_21 = arith.constant 0 : index
    %38 = vector.load %arg2[%c0_20, %c0_21] : memref<16x128xf32, #tpu.memory_space<vmem>>, vector<16x128xf32>
    tpu.vector_store %arg2[%c0_20, %c0_21], %37 {strides = array<i32>} : memref<16x128xf32, #tpu.memory_space<vmem>>, vector<16x128xf32>,
    return
  }
}

</mosaic_0001>

<bundles_post_ra>
// kernel: mlp_forward.1
= control target key start
LH: loop header
LB: loop body
LE: loop exit
PB: predicated region body
PF: predicated region fallthrough
CT: control target
= control target key end

     0   :  { %7 = vsyncpa [#allocation3], 0  ;;  %s717_s9 = smov [#allocation2]   ;;  %s802_s0 = inlined_call_operand.vmem [shape: bf16[16,128], index: 0, kind: input, shape index: {}]   ;;  %s803_s1 = inlined_call_operand.hbm [shape: bf16[4,128,128], index: 1, kind: input, shape index: {}]   ;;  %s804_s2 = inlined_call_operand.vmem [shape: f32[16,128], index: 2, kind: output, shape index: {}]  }
   0x1   :  { %s15_s10 = sshll.u32 %s717_s9, 4  ;;  %s693_s13 = scalar_lea.hbm %s803_s1, 4096  ;;  %s16_s10 = int_to_ptr.vmem [resolvable:$true] %s15_s10 }
   0x2   :  { %p694_p0 = scmp.ne.s32.totalorder %s803_s1, %s693_s13  ;;  %p697_p1 = scmp.lt.u32.totalorder %s693_s13, %s803_s1 }
   0x4   :  { %p699_p2 = pnand %p697_p1, %p694_p0 }
   0x6   :  { %702 = shalt.err (!%p699_p2)
}
   0x7   :  { %s703_s18 = scalar_lea.vmem %s16_s10, 4096  ;;  %p708_p4 = scmp.lt.s32.totalorder %s16_s10, %s16_s10 }
   0x8   :  { %p704_p3 = scmp.ne.s32.totalorder %s16_s10, %s703_s18  ;;  %p709_p5 = scmp.lt.s32.totalorder %s703_s18, %s703_s18 }
   0xa   :  { %p710_p6 = por %p709_p5, %p708_p4 }
   0xc   :  { %p711_p7 = pnand %p710_p6, %p704_p3 }
   0xe   :  { %714 = shalt.err (!%p711_p7)
}
   0xf   :  { %s718_s19 = smov 64   ;;  %s719_s20 = smov 4  }
  0x10   :  { %21 = dma.hbm_to_vmem [thread:$0]  %s803_s1, 4096, %s16_s10, [#allocation3], %s718_s19, %s718_s19, %s719_s20  }
  0x11   :  { %715 = dma.done.wait [#allocation3], 4096  }
  0x12   :  { %716 = vsyncadd [#allocation3], 4294963200  ;;  %v720_v0 = vmov 0.0   ;;  %vm721_vm0 = vmmov 0   ;;  %v652_v1 = vld [vmem:[#allocation2] sm:$0xff]   ;;  %v653_v2 = vld [vmem:[#allocation2 + $0x8] sm:$0xff]   ;;  %v466_v55 = vlaneseq }
  0x13   :  { %567 = vmatprep.subr.bf16.mxu0 %v720_v0  ;;  %583 = vmatprep.mubr.msk.bf16.mxu0 %vm721_vm0, %v720_v0  ;;  %v654_v3 = vld [vmem:[#allocation2 + $0x10] sm:$0xff]   ;;  %v661_v4 = vld [vmem:[#allocation2 + $0x40] sm:$0xff]   ;;  %v655_v5 = vld [vmem:[#allocation2 + $0x18] sm:$0xff]  }
  0x14   :  { %587 = vmatprep.subr.bf16.mxu1 %v720_v0  ;;  %603 = vmatprep.mubr.msk.bf16.mxu1 %vm721_vm0, %v720_v0  ;;  %v662_v6 = vld [vmem:[#allocation2 + $0x48] sm:$0xff]   ;;  %v656_v7 = vld [vmem:[#allocation2 + $0x20] sm:$0xff]   ;;  %v663_v8 = vld [vmem:[#allocation2 + $0x50] sm:$0xff]   ;;  %v467_v56 = vand.u32 127, %v466_v55 }
  0x15   :  { %568 = vmatpush3.bf16.msra.mxu0 %v652_v1  ;;  %588 = vmatpush3.bf16.msra.mxu1 %v661_v4  ;;  %v657_v9 = vld [vmem:[#allocation2 + $0x28] sm:$0xff]   ;;  %v664_v10 = vld [vmem:[#allocation2 + $0x58] sm:$0xff]   ;;  %v658_v11 = vld [vmem:[#allocation2 + $0x30] sm:$0xff]  }
  0x16   :  { %569 = vmatprep.subr.bf16.mxu0 %v720_v0  ;;  %589 = vmatprep.subr.bf16.mxu1 %v720_v0  ;;  %v665_v12 = vld [vmem:[#allocation2 + $0x60] sm:$0xff]   ;;  %v659_v13 = vld [vmem:[#allocation2 + $0x38] sm:$0xff]   ;;  %v666_v14 = vld [vmem:[#allocation2 + $0x68] sm:$0xff]   ;;  %vm468_vm1 = vcmp.lt.s32.totalorder %v467_v56, 4 }
  0x17   :  { %v660_v15 = vld [vmem:[%s802_s0] sm:$0xff]   ;;  %v667_v16 = vld [vmem:[#allocation2 + $0x70] sm:$0xff]   ;;  %v668_v17 = vld [vmem:[#allocation2 + $0x78] sm:$0xff]  }
  0x18   :  { %v669_v18 = vld [vmem:[#allocation2 + $0x80] sm:$0xff]   ;;  %v670_v19 = vld [vmem:[#allocation2 + $0x88] sm:$0xff]   ;;  %v671_v20 = vld [vmem:[#allocation2 + $0x90] sm:$0xff]  }
  0x19   :  { %570 = vmatpush3.bf16.msra.mxu0 %v653_v2  ;;  %590 = vmatpush3.bf16.msra.mxu1 %v662_v6  ;;  %v672_v21 = vld [vmem:[#allocation2 + $0x98] sm:$0xff]   ;;  %v673_v22 = vld [vmem:[#allocation2 + $0xa0] sm:$0xff]   ;;  %v674_v23 = vld [vmem:[#allocation2 + $0xa8] sm:$0xff]  }
  0x1a   :  { %571 = vmatprep.subr.bf16.mxu0 %v720_v0  ;;  %591 = vmatprep.subr.bf16.mxu1 %v720_v0  ;;  %v675_v31 = vld [vmem:[#allocation2 + $0xb0] sm:$0xff]   ;;  %v676_v32 = vld [vmem:[#allocation2 + $0xb8] sm:$0xff]   ;;  %v677_v33 = vld [vmem:[#allocation2 + $0xc0] sm:$0xff]  }
  0x1b   :  { %v678_v34 = vld [vmem:[#allocation2 + $0xc8] sm:$0xff]   ;;  %v679_v35 = vld [vmem:[#allocation2 + $0xd0] sm:$0xff]   ;;  %v680_v36 = vld [vmem:[#allocation2 + $0xd8] sm:$0xff]  }
  0x1c   :  { %v681_v37 = vld [vmem:[#allocation2 + $0xe0] sm:$0xff]   ;;  %v682_v38 = vld [vmem:[#allocation2 + $0xe8] sm:$0xff]   ;;  %v683_v46 = vld [vmem:[#allocation2 + $0xf0] sm:$0xff]  }
  0x1d   :  { %572 = vmatpush3.bf16.msra.mxu0 %v654_v3  ;;  %592 = vmatpush3.bf16.msra.mxu1 %v663_v8  ;;  %v684_v47 = vld [vmem:[#allocation2 + $0xf8] sm:$0xff]  }
  0x1e   :  { %573 = vmatprep.subr.bf16.mxu0 %v720_v0  ;;  %593 = vmatprep.subr.bf16.mxu1 %v720_v0 }
  0x21   :  { %574 = vmatpush3.bf16.msra.mxu0 %v655_v5  ;;  %594 = vmatpush3.bf16.msra.mxu1 %v664_v10 }
  0x22   :  { %575 = vmatprep.subr.bf16.mxu0 %v720_v0  ;;  %595 = vmatprep.subr.bf16.mxu1 %v720_v0 }
  0x25   :  { %576 = vmatpush3.bf16.msra.mxu0 %v656_v7  ;;  %596 = vmatpush3.bf16.msra.mxu1 %v665_v12 }
  0x26   :  { %577 = vmatprep.subr.bf16.mxu0 %v720_v0  ;;  %597 = vmatprep.subr.bf16.mxu1 %v720_v0 }
  0x29   :  { %578 = vmatpush3.bf16.msra.mxu0 %v657_v9  ;;  %598 = vmatpush3.bf16.msra.mxu1 %v666_v14 }
  0x2a   :  { %579 = vmatprep.subr.bf16.mxu0 %v720_v0  ;;  %599 = vmatprep.subr.bf16.mxu1 %v720_v0 }
  0x2d   :  { %580 = vmatpush3.bf16.msra.mxu0 %v658_v11  ;;  %600 = vmatpush3.bf16.msra.mxu1 %v667_v16 }
  0x2e   :  { %581 = vmatprep.subr.bf16.mxu0 %v720_v0  ;;  %601 = vmatprep.subr.bf16.mxu1 %v720_v0 }
  0x31   :  { %582 = vmatpush3.bf16.msra.mxu0 %v659_v13  ;;  %602 = vmatpush3.bf16.msra.mxu1 %v668_v17 }
  0x32   :  { %607 = vmatprep.subr.bf16.mxu0 %v720_v0  ;;  %627 = vmatprep.subr.bf16.mxu1 %v720_v0 }
  0x34   :  { %584 = vmatmul.mubr.bf16.vlgmr.msra.gmra.mrb[0].mxu0 %v660_v15 }
  0x35   :  { %623 = vmatprep.mubr.msk.bf16.mxu0 %vm721_vm0, %v720_v0  ;;  %608 = vmatpush3.bf16.msra.mxu0 %v669_v18 }
  0x36   :  { %609 = vmatprep.subr.bf16.mxu0 %v720_v0 }
  0x39   :  { %610 = vmatpush3.bf16.msra.mxu0 %v670_v19 }
  0x3a   :  { %611 = vmatprep.subr.bf16.mxu0 %v720_v0 }
  0x3d   :  { %612 = vmatpush3.bf16.msra.mxu0 %v671_v20 }
  0x3e   :  { %613 = vmatprep.subr.bf16.mxu0 %v720_v0 }
  0x41   :  { %614 = vmatpush3.bf16.msra.mxu0 %v672_v21 }
  0x42   :  { %615 = vmatprep.subr.bf16.mxu0 %v720_v0 }
  0x45   :  { %616 = vmatpush3.bf16.msra.mxu0 %v673_v22 }
  0x46   :  { %617 = vmatprep.subr.bf16.mxu0 %v720_v0 }
  0x49   :  { %618 = vmatpush3.bf16.msra.mxu0 %v674_v23 }
  0x4a   :  { %619 = vmatprep.subr.bf16.mxu0 %v720_v0 }
  0x4d   :  { %620 = vmatpush3.bf16.msra.mxu0 %v675_v31 }
  0x4e   :  { %621 = vmatprep.subr.bf16.mxu0 %v720_v0 }
  0x51   :  { %622 = vmatpush3.bf16.msra.mxu0 %v676_v32 }
 0x107   :  { %v132_v24 = vpop.f32.mrb[0].mxu0 }
 0x108   :  { %v585_v25 = vpop.f32.mrb[1].mxu0  ;;  %v139_v27 = vmax.f32 %v132_v24, 0.0 }
 0x109   :  { %v135_v26 = vpop.f32.mrb[2].mxu0 }
 0x10a   :  { %v140_v28 = vmax.f32 %v135_v26, 0.0  ;;  %v586_v29 = vpop.f32.mrb[3].mxu0 }
 0x10c   :  { %v141_v30 = vpack.c.bf16 %v140_v28, %v139_v27 }
 0x10e   :  { %604 = vmatmul.mubr.bf16.vlgmr.msra.gmra.mrb[0].mxu1 %v141_v30 }
 0x10f   :  { %643 = vmatprep.mubr.msk.bf16.mxu1 %vm721_vm0, %v720_v0  ;;  %628 = vmatpush3.bf16.msra.mxu1 %v677_v33 }
 0x110   :  { %629 = vmatprep.subr.bf16.mxu1 %v720_v0 }
 0x113   :  { %630 = vmatpush3.bf16.msra.mxu1 %v678_v34 }
 0x114   :  { %631 = vmatprep.subr.bf16.mxu1 %v720_v0 }
 0x117   :  { %632 = vmatpush3.bf16.msra.mxu1 %v679_v35 }
 0x118   :  { %633 = vmatprep.subr.bf16.mxu1 %v720_v0 }
 0x11b   :  { %634 = vmatpush3.bf16.msra.mxu1 %v680_v36 }
 0x11c   :  { %635 = vmatprep.subr.bf16.mxu1 %v720_v0 }
 0x11f   :  { %636 = vmatpush3.bf16.msra.mxu1 %v681_v37 }
 0x120   :  { %637 = vmatprep.subr.bf16.mxu1 %v720_v0 }
 0x123   :  { %638 = vmatpush3.bf16.msra.mxu1 %v682_v38 }
 0x124   :  { %639 = vmatprep.subr.bf16.mxu1 %v720_v0 }
 0x127   :  { %640 = vmatpush3.bf16.msra.mxu1 %v683_v46 }
 0x128   :  { %641 = vmatprep.subr.bf16.mxu1 %v720_v0 }
 0x12b   :  { %642 = vmatpush3.bf16.msra.mxu1 %v684_v47 }
 0x1e1   :  { %v241_v39 = vpop.f32.mrb[0].mxu1 }
 0x1e2   :  { %v605_v40 = vpop.f32.mrb[1].mxu1  ;;  %v248_v42 = vmax.f32 %v241_v39, 0.0 }
 0x1e3   :  { %v244_v41 = vpop.f32.mrb[2].mxu1 }
 0x1e4   :  { %v249_v43 = vmax.f32 %v244_v41, 0.0  ;;  %v606_v44 = vpop.f32.mrb[3].mxu1 }
 0x1e6   :  { %v250_v45 = vpack.c.bf16 %v249_v43, %v248_v42 }
 0x1e8   :  { %624 = vmatmul.mubr.bf16.vlgmr.msra.gmra.mrb[4].mxu0 %v250_v45 }
 0x2bb   :  { %v350_v48 = vpop.f32.mrb[4].mxu0 }
 0x2bc   :  { %v625_v49 = vpop.f32.mrb[5].mxu0  ;;  %v357_v51 = vmax.f32 %v350_v48, 0.0 }
 0x2bd   :  { %v353_v50 = vpop.f32.mrb[6].mxu0 }
 0x2be   :  { %v358_v52 = vmax.f32 %v353_v50, 0.0  ;;  %v626_v53 = vpop.f32.mrb[7].mxu0 }
 0x2c0   :  { %v359_v54 = vpack.c.bf16 %v358_v52, %v357_v51 }
 0x2c2   :  { %644 = vmatmul.mubr.bf16.vlgmr.msra.gmra.mrb[4].mxu1 %v359_v54 }
 0x395   :  { %v459_v57 = vpop.f32.mrb[4].mxu1 }
 0x396   :  { %v645_v58 = vpop.f32.mrb[5].mxu1  ;;  %v469_v59 = vsel %vm468_vm1, %v459_v57, -inf }
 0x397   :  { %471 = vmax.xlane.f32.xlu0 %v469_v59  ;;  %v462_v60 = vpop.f32.mrb[6].mxu1 }
 0x398   :  { %v646_v61 = vpop.f32.mrb[7].mxu1  ;;  %v470_v62 = vsel %vm468_vm1, %v462_v60, -inf }
 0x39b   :  { %473 = vmax.xlane.f32.xlu0 %v470_v62 }
 0x424   :  { %v472_v63 = vpop.xlane.xlu0 %471 }
 0x425   :  { %v475_v0 = vsub.f32 %v469_v59, %v472_v63 }
 0x427   :  { %v477_v1 = vmul.f32 1.442695, %v475_v0 }
 0x428   :  { %v474_v2 = vpop.xlane.xlu0 %473 }
 0x429   :  { %685 = vpow2.f32 %v477_v1  ;;  %v476_v3 = vsub.f32 %v470_v62, %v474_v2 }
 0x42b   :  { %v479_v4 = vmul.f32 1.442695, %v476_v3 }
 0x42d   :  { %687 = vpow2.f32 %v479_v4 }
 0x433   :  { %v686_v5 = vpop.eup %685 }
 0x434   :  { %v481_v6 = vsel %vm468_vm1, %v686_v5, 0.0 }
 0x435   :  { %483 = vadd.xlane.f32.xlu1 %v481_v6 }
 0x437   :  { %v688_v7 = vpop.eup %687 }
 0x438   :  { %v482_v8 = vsel %vm468_vm1, %v688_v7, 0.0 }
 0x439   :  { %485 = vadd.xlane.f32.xlu1 %v482_v8 }
 0x4c2   :  { %v484_v9 = vpop.xlane.xlu1 %483 }
 0x4c3   :  { %689 = vrcp.f32 %v484_v9 }
 0x4c6   :  { %v486_v10 = vpop.xlane.xlu1 %485 }
 0x4c7   :  { %691 = vrcp.f32 %v486_v10 }
 0x4cd   :  { %v690_v11 = vpop.eup %689 }
 0x4ce   :  { %v488_v12 = vmul.f32 %v690_v11, %v481_v6 }
 0x4d0   :  { %491 = vst [vmem:[%s804_s2] sm:$0xff] %v488_v12 }
 0x4d1   :  { %v692_v13 = vpop.eup %691 }
 0x4d2   :  { %v490_v14 = vmul.f32 %v692_v13, %v482_v8 }
 0x4d4   :  { %492 = vst [vmem:[%s804_s2 + $0x8] sm:$0xff] %v490_v14 }
 0x4d5   :  { %497 = vsyncpa [#allocation3], 1 }

</bundles_post_ra>
